<compile_context>
chip_gen: v6e
topology: v6e:2x2x1
jax: 0.10.0
libtpu: 0.0.40
codegen_flags: <defaults>
</compile_context>

<pallas_src>
import functools
import math

import jax
import jax.numpy as jnp
from jax.experimental import pallas as pl
from jax.experimental.pallas import tpu as pltpu


LAYER_DIMS = [6, 32, 32, 3]
MU = 32.0


def _round_up(x, m):
    return ((x + m - 1) // m) * m


def _device_tuning():
    """Pick activation dtype, row tile and VMEM budget from the local TPU."""
    kind = ""
    try:
        kind = jax.devices()[0].device_kind.lower()
    except Exception:
        pass
    is_v7 = "v7" in kind
    has_bf16_vpu = is_v7 or ("v6" in kind) or ("trillium" in kind)
    act_dtype = jnp.bfloat16 if has_bf16_vpu else jnp.float32  # v5e: f32 VALU only
    tm = 8192 if is_v7 else 16384            # v7x has 64 MiB VMEM vs 128 MiB
    vmem_limit = (32 << 20) if is_v7 else (64 << 20)
    return act_dtype, tm, vmem_limit


def _mlp_kernel(x_ref, w0_ref, w1_ref, b1_ref, w2_ref, b2_ref, o_ref, *, mu, act_dtype):
    # Feature-major: x_ref is (8, tm) bf16 with rows on the 128-lane axis.
    # Feature row 6 is the constant-1 row (folded layer-0 bias), row 7 is zero.
    x = x_ref[...]

    # layer 0: h = W0p @ x   (bias folded into W0p's 7th column); LeakyReLU(0.01)
    h = jnp.dot(w0_ref[...], x, preferred_element_type=act_dtype)
    h = jnp.maximum(h, 0.01 * h)

    # layer 1: Linear + LeakyReLU(0.01)
    h = jnp.dot(w1_ref[...], h, preferred_element_type=act_dtype) + b1_ref[...]
    h = jnp.maximum(h, 0.01 * h)

    # layer 2: Linear (no activation); accumulate / post-process in f32.
    y = jnp.dot(w2_ref[...], h, preferred_element_type=jnp.float32) + b2_ref[...]

    # post_process: relu(inv_mu_transform(y, mu)) with the standard inverse
    # mu-law companding:  inv_mu(y) = ((1+mu)^y - 1) / mu
    # TODO(synk): inv_mu_transform is defined outside the provided module; the
    # standard inverse mu-law transform is assumed here (no clamp on y, so very
    # large positive pre-activations overflow, matching that assumption).
    y = jnp.maximum((jnp.exp(y * math.log1p(mu)) - 1.0) * (1.0 / mu), 0.0)

    o_ref[...] = y


def mlp_pallas(x_fm, params, mu=MU, tm=None):
    """x_fm: (6, rows) feature-major (rows on the lane axis), ideally bf16.
    params: w{i} (out, in), b{i} (out, 1)  (PyTorch Linear convention).
    Returns (3, rows) float32, feature-major."""
    act_dtype, tm_default, vmem_limit = _device_tuning()
    if tm is None:
        tm = tm_default

    if x_fm.dtype != jnp.bfloat16:
        x_fm = x_fm.astype(jnp.bfloat16)

    d_in, rows = x_fm.shape

    # Append the constant-1 feature row (folded layer-0 bias) and a zero pad
    # row so the feature dim is a sublane-friendly 8.
    x_fm = jnp.concatenate(
        [x_fm,
         jnp.ones((1, rows), jnp.bfloat16),
         jnp.zeros((1, rows), jnp.bfloat16)],
        axis=0)
    d_in_p = d_in + 2  # == 8

    # Row tile: big enough to amortize per-step overhead, lane-aligned, and
    # clamped so medium inputs still produce >=2 grid steps (megacore on v7x).
    tm = min(tm, _round_up(pl.cdiv(rows, 2), 128))
    tm = max(tm, 128)
    rows_p = _round_up(rows, tm)
    if rows_p != rows:
        x_fm = jnp.pad(x_fm, ((0, 0), (0, rows_p - rows)))

    # Pack weights once: fold b0 into an extra column of w0; bf16 weights give
    # single-pass MXU matmuls (inputs are already bf16-quantized).
    w0, b0 = params["w0"], params["b0"]
    d_h0 = w0.shape[0]
    w0p = jnp.concatenate(
        [w0, b0, jnp.zeros((d_h0, 1), w0.dtype)], axis=1).astype(jnp.bfloat16)  # (32, 8)
    w1 = params["w1"].astype(jnp.bfloat16)
    b1 = params["b1"].astype(act_dtype)
    w2 = params["w2"].astype(jnp.bfloat16)
    b2 = params["b2"].astype(jnp.float32)
    d_h1 = w1.shape[0]
    d_out = w2.shape[0]

    kernel = functools.partial(_mlp_kernel, mu=float(mu), act_dtype=act_dtype)

    out = pl.pallas_call(
        kernel,
        out_shape=jax.ShapeDtypeStruct((d_out, rows_p), jnp.float32),
        grid_spec=pltpu.PrefetchScalarGridSpec(
            num_scalar_prefetch=0,
            grid=(rows_p // tm,),
            in_specs=[
                pl.BlockSpec((d_in_p, tm), lambda i: (0, i)),     # x tile (feature-major)
                pl.BlockSpec((d_h0, d_in_p), lambda i: (0, 0)),   # w0 (+bias col), resident
                pl.BlockSpec((d_h1, d_h0), lambda i: (0, 0)),     # w1
                pl.BlockSpec((d_h1, 1), lambda i: (0, 0)),        # b1
                pl.BlockSpec((d_out, d_h1), lambda i: (0, 0)),    # w2
                pl.BlockSpec((d_out, 1), lambda i: (0, 0)),       # b2
            ],
            out_specs=pl.BlockSpec((d_out, tm), lambda i: (0, i)),
        ),
        compiler_params=pltpu.CompilerParams(
            dimension_semantics=("parallel",),
            vmem_limit_bytes=vmem_limit),
    )(x_fm, w0p, w1, b1, w2, b2)

    return out[:, :rows]


def init_params(key, layer_dims=LAYER_DIMS):
    """Deterministic init mirroring the PyTorch module. Weights stored (out, in),
    biases (out, 1) — PyTorch Linear convention."""
    params = {}
    keys = jax.random.split(key, 2 * (len(layer_dims) - 1))
    for i in range(len(layer_dims) - 1):
        fan_in, fan_out = layer_dims[i], layer_dims[i + 1]
        wk, bk = keys[2 * i], keys[2 * i + 1]
        if i < len(layer_dims) - 2:
            # xavier_uniform weight, zero bias
            limit = (6.0 / (fan_in + fan_out)) ** 0.5
            w = jax.random.uniform(wk, (fan_out, fan_in), jnp.float32, -limit, limit)
            b = jnp.zeros((fan_out, 1), jnp.float32)
        else:
            # PyTorch default Linear init
            limit = (1.0 / fan_in) ** 0.5
            w = jax.random.uniform(wk, (fan_out, fan_in), jnp.float32, -limit, limit)
            b = jax.random.uniform(bk, (fan_out, 1), jnp.float32, -limit, limit)
        params[f"w{i}"] = w
        params[f"b{i}"] = b
    return params


def mlp_forward(wi, wo, params, mu=MU):
    """Matches MLP.forward: wi (B, 3); wo (B, 3) or (B, N, 3). Returns (rows, 3)."""
    if wo.ndim == 3:
        B, N, _ = wo.shape
        wi = jnp.broadcast_to(wi[:, None, :], (B, N, wi.shape[-1]))
    x = jnp.concatenate([wi, wo], axis=-1).reshape(-1, LAYER_DIMS[0])
    # bf16 BEFORE the layout transpose (halves that pass's HBM traffic), then
    # go feature-major so rows sit on the 128-lane axis.
    x_fm = x.astype(jnp.bfloat16).T                     # (6, rows) bf16
    out_fm = mlp_pallas(x_fm, params, mu=mu)            # (3, rows) f32, lane-dense
    return out_fm.T                                     # (rows, 3)


def _reference_f32(wi, wo, params, mu=MU):
    """Unquantized f32 reference of the PyTorch forward (no bf16 anywhere)."""
    if wo.ndim == 3:
        B, N, _ = wo.shape
        wi = jnp.broadcast_to(wi[:, None, :], (B, N, wi.shape[-1]))
    x = jnp.concatenate([wi, wo], axis=-1).reshape(-1, LAYER_DIMS[0]).astype(jnp.float32)
    h = x @ params["w0"].T + params["b0"].T
    h = jnp.where(h > 0, h, 0.01 * h)
    h = h @ params["w1"].T + params["b1"].T
    h = jnp.where(h > 0, h, 0.01 * h)
    y = h @ params["w2"].T + params["b2"].T
    return jnp.maximum((jnp.exp(y * math.log1p(mu)) - 1.0) / mu, 0.0)


if __name__ == "__main__":
    key = jax.random.PRNGKey(0)
    kp, kwi, kwo, kwi2, kwo2 = jax.random.split(key, 5)

    params = init_params(kp)

    # Small shape matching the module's forward: wi (B,3), wo (B,N,3).
    B, N = 2, 8
    wi = jax.random.normal(kwi, (B, 3), jnp.float32)       # incident directions
    wo = jax.random.normal(kwo, (B, N, 3), jnp.float32)    # outgoing directions

    out = jax.block_until_ready(mlp_forward(wi, wo, params))
    ref = _reference_f32(wi, wo, params)
    assert out.shape == (B * N, 3), out.shape
    # Tolerance vs the UNquantized f32 reference (kernel runs bf16 weights /
    # bf16-quantized inputs; exp amplifies ~bf16-ulp errors by ~log1p(mu)*|y|).
    assert jnp.allclose(out, ref, atol=3e-2, rtol=1e-1), (
        "mismatch vs f32 reference; max abs err = "
        + str(float(jnp.max(jnp.abs(out - ref)))))

    # Second check: 2-D wo branch and a row count that exercises row padding
    # and a multi-step grid (megacore sharding path on v7x).
    B2 = 300
    wi2 = jax.random.normal(kwi2, (B2, 3), jnp.float32)
    wo2 = jax.random.normal(kwo2, (B2, 3), jnp.float32)
    out2 = jax.block_until_ready(mlp_forward(wi2, wo2, params))
    ref2 = _reference_f32(wi2, wo2, params)
    assert out2.shape == (B2, 3), out2.shape
    assert jnp.allclose(out2, ref2, atol=3e-2, rtol=1e-1), (
        "mismatch vs f32 reference (multi-step grid); max abs err = "
        + str(float(jnp.max(jnp.abs(out2 - ref2)))))

    print("KERNEL_OK")
</pallas_src>

<mosaic_0001>
module attributes {stable_mosaic.version = 11 : i64} {
  func.func @_mlp_kernel(%arg0: i32, %arg1: memref<8x128xbf16, #tpu.memory_space<vmem>>, %arg2: memref<32x8xbf16, #tpu.memory_space<vmem>>, %arg3: memref<32x32xbf16, #tpu.memory_space<vmem>>, %arg4: memref<32x1xf32, #tpu.memory_space<vmem>>, %arg5: memref<3x32xbf16, #tpu.memory_space<vmem>>, %arg6: memref<3x1xf32, #tpu.memory_space<vmem>>, %arg7: memref<3x128xf32, #tpu.memory_space<vmem>>) attributes {dimension_semantics = [#tpu.dimension_semantics<parallel>], iteration_bounds = array<i64: 1>, scalar_prefetch = 0 : i64, scratch_operands = 0 : i64, tpu.core_type = #tpu.core_type<tc>, window_params = [{transform_indices = @transform_0, window_bounds = array<i64: 8, 128>}, {pipeline_mode = #tpu.pipeline_mode<synchronous>, transform_indices = @transform_1, window_bounds = array<i64: 32, 8>}, {pipeline_mode = #tpu.pipeline_mode<synchronous>, transform_indices = @transform_2, window_bounds = array<i64: 32, 32>}, {pipeline_mode = #tpu.pipeline_mode<synchronous>, transform_indices = @transform_3, window_bounds = array<i64: 32, 1>}, {pipeline_mode = #tpu.pipeline_mode<synchronous>, transform_indices = @transform_4, window_bounds = array<i64: 3, 32>}, {pipeline_mode = #tpu.pipeline_mode<synchronous>, transform_indices = @transform_5, window_bounds = array<i64: 3, 1>}, {transform_indices = @transform_6, window_bounds = array<i64: 3, 128>}]} {
    %c0 = arith.constant 0 : index
    %c0_0 = arith.constant 0 : index
    %0 = vector.load %arg1[%c0, %c0_0] : memref<8x128xbf16, #tpu.memory_space<vmem>>, vector<8x128xbf16>
    %c0_1 = arith.constant 0 : index
    %c0_2 = arith.constant 0 : index
    %1 = vector.load %arg2[%c0_1, %c0_2] : memref<32x8xbf16, #tpu.memory_space<vmem>>, vector<32x8xbf16>
    %cst = arith.constant dense<0.000000e+00> : vector<32x128xf32>
    %2 = tpu.matmul %1, %0, %cst {dimension_numbers = #tpu.dot_dimension_numbers<[1], [0], [0], [1], [0, 0, 1, 1], [], []>} : vector<32x8xbf16>, vector<8x128xbf16>, vector<32x128xf32> -> vector<32x128xf32>
    %cst_3 = arith.constant 0.00999999977 : f32
    %3 = vector.broadcast %cst_3 : f32 to vector<32x128xf32>
    %4 = arith.mulf %3, %2 : vector<32x128xf32>
    %5 = arith.maximumf %2, %4 : vector<32x128xf32>
    %c0_4 = arith.constant 0 : index
    %c0_5 = arith.constant 0 : index
    %6 = vector.load %arg3[%c0_4, %c0_5] : memref<32x32xbf16, #tpu.memory_space<vmem>>, vector<32x32xbf16>
    %cst_6 = arith.constant dense<0.000000e+00> : vector<32x128xf32>
    %7 = tpu.matmul %6, %5, %cst_6 {dimension_numbers = #tpu.dot_dimension_numbers<[1], [0], [0], [1], [0, 0, 1, 1], [], []>} : vector<32x32xbf16>, vector<32x128xf32>, vector<32x128xf32> -> vector<32x128xf32>
    %c0_7 = arith.constant 0 : index
    %c0_8 = arith.constant 0 : index
    %8 = vector.load %arg4[%c0_7, %c0_8] : memref<32x1xf32, #tpu.memory_space<vmem>>, vector<32x1xf32>
    %9 = vector.broadcast %8 : vector<32x1xf32> to vector<32x128xf32>
    %10 = arith.addf %7, %9 : vector<32x128xf32>
    %cst_9 = arith.constant 0.00999999977 : f32
    %11 = vector.broadcast %cst_9 : f32 to vector<32x128xf32>
    %12 = arith.mulf %11, %10 : vector<32x128xf32>
    %13 = arith.maximumf %10, %12 : vector<32x128xf32>
    %c0_10 = arith.constant 0 : index
    %c0_11 = arith.constant 0 : index
    %14 = vector.load %arg5[%c0_10, %c0_11] : memref<3x32xbf16, #tpu.memory_space<vmem>>, vector<3x32xbf16>
    %cst_12 = arith.constant dense<0.000000e+00> : vector<3x128xf32>
    %15 = tpu.matmul %14, %13, %cst_12 {dimension_numbers = #tpu.dot_dimension_numbers<[1], [0], [0], [1], [0, 0, 1, 1], [], []>} : vector<3x32xbf16>, vector<32x128xf32>, vector<3x128xf32> -> vector<3x128xf32>
    %c0_13 = arith.constant 0 : index
    %c0_14 = arith.constant 0 : index
    %16 = vector.load %arg6[%c0_13, %c0_14] : memref<3x1xf32, #tpu.memory_space<vmem>>, vector<3x1xf32>
    %17 = vector.broadcast %16 : vector<3x1xf32> to vector<3x128xf32>
    %18 = arith.addf %15, %17 : vector<3x128xf32>
    %cst_15 = arith.constant 3.49650764 : f32
    %19 = vector.broadcast %cst_15 : f32 to vector<3x128xf32>
    %20 = arith.mulf %18, %19 : vector<3x128xf32>
    %21 = math.exp %20 : vector<3x128xf32>
    %cst_16 = arith.constant 1.000000e+00 : f32
    %22 = vector.broadcast %cst_16 : f32 to vector<3x128xf32>
    %23 = arith.subf %21, %22 : vector<3x128xf32>
    %cst_17 = arith.constant 3.125000e-02 : f32
    %24 = vector.broadcast %cst_17 : f32 to vector<3x128xf32>
    %25 = arith.mulf %23, %24 : vector<3x128xf32>
    %cst_18 = arith.constant 0.000000e+00 : f32
    %26 = vector.broadcast %cst_18 : f32 to vector<3x128xf32>
    %27 = arith.maximumf %25, %26 : vector<3x128xf32>
    %c0_19 = arith.constant 0 : index
    %c0_20 = arith.constant 0 : index
    %28 = vector.load %arg7[%c0_19, %c0_20] : memref<3x128xf32, #tpu.memory_space<vmem>>, vector<3x128xf32>
    tpu.vector_store %arg7[%c0_19, %c0_20], %27 {strides = array<i32>} : memref<3x128xf32, #tpu.memory_space<vmem>>, vector<3x128xf32>,
    return
  }
  func.func @transform_0(%arg0: i32) -> (i32, i32) {
    %c0_i32 = arith.constant 0 : i32
    %c0_i32_0 = arith.constant 0 : i32
    return %c0_i32, %arg0 : i32, i32
  }
  func.func @transform_1(%arg0: i32) -> (i32, i32) {
    %c0_i32 = arith.constant 0 : i32
    %c0_i32_0 = arith.constant 0 : i32
    %c0_i32_1 = arith.constant 0 : i32
    return %c0_i32, %c0_i32_0 : i32, i32
  }
  func.func @transform_2(%arg0: i32) -> (i32, i32) {
    %c0_i32 = arith.constant 0 : i32
    %c0_i32_0 = arith.constant 0 : i32
    %c0_i32_1 = arith.constant 0 : i32
    return %c0_i32, %c0_i32_0 : i32, i32
  }
  func.func @transform_3(%arg0: i32) -> (i32, i32) {
    %c0_i32 = arith.constant 0 : i32
    %c0_i32_0 = arith.constant 0 : i32
    %c0_i32_1 = arith.constant 0 : i32
    return %c0_i32, %c0_i32_0 : i32, i32
  }
  func.func @transform_4(%arg0: i32) -> (i32, i32) {
    %c0_i32 = arith.constant 0 : i32
    %c0_i32_0 = arith.constant 0 : i32
    %c0_i32_1 = arith.constant 0 : i32
    return %c0_i32, %c0_i32_0 : i32, i32
  }
  func.func @transform_5(%arg0: i32) -> (i32, i32) {
    %c0_i32 = arith.constant 0 : i32
    %c0_i32_0 = arith.constant 0 : i32
    %c0_i32_1 = arith.constant 0 : i32
    return %c0_i32, %c0_i32_0 : i32, i32
  }
  func.func @transform_6(%arg0: i32) -> (i32, i32) {
    %c0_i32 = arith.constant 0 : i32
    %c0_i32_0 = arith.constant 0 : i32
    return %c0_i32, %arg0 : i32, i32
  }
}

</mosaic_0001>

<bundles_post_ra>
// kernel: tpu_custom_call.1
= control target key start
LH: loop header
LB: loop body
LE: loop exit
PB: predicated region body
PF: predicated region fallthrough
CT: control target
= control target key end

     0   :  { %vm47_vm0 = vcmask 1043456   ;;  %vm40_vm1 = vcmask 64512   ;;  %s512_s0 = inlined_call_operand.vmem [shape: bf16[8,128], index: 0, kind: input, shape index: {}]   ;;  %s513_s1 = inlined_call_operand.vmem [shape: bf16[32,8], index: 1, kind: input, shape index: {}]   ;;  %s514_s2 = inlined_call_operand.vmem [shape: bf16[32,32], index: 2, kind: input, shape index: {}]   ;;  %s515_s3 = inlined_call_operand.vmem [shape: f32[32,1], index: 3, kind: input, shape index: {}]   ;;  %s516_s4 = inlined_call_operand.vmem [shape: bf16[3,32], index: 4, kind: input, shape index: {}]   ;;  %s517_s5 = inlined_call_operand.vmem [shape: f32[3,1], index: 5, kind: input, shape index: {}]   ;;  %s518_s6 = inlined_call_operand.hbm [shape: f32[3,128], index: 6, kind: output, shape index: {}]  }
   0x1   :  { %v25_v0 = vld [vmem:[%s512_s0] sm:$0xf]  ;;  %v407_v3 = vld [vmem:[%s513_s1 + $0x8] sm:$0xff]  }
   0x2   :  { %v406_v1 = vld [vmem:[%s513_s1] sm:$0xff]   ;;  %399 = vmatprep.subr.msk.bf16.mxu0 %vm47_vm0, %v25_v0  ;;  %v49_v2 = vsel %vm47_vm0, %v25_v0, 0 }
   0x3   :  { %370 = vmatpush3.bf16.msra.mxu0 %v49_v2  ;;  %371 = vmatprep.mubr.msk.bf16.mxu0 %vm40_vm1, %v406_v1 }
   0x4   :  { %11 = vsyncpa [#allocation3], 0  ;;  %v408_v4 = vld [vmem:[%s514_s2] sm:$0xff]   ;;  %vm146_vm2 = vcmask 261120   ;;  %v115_v5 = vld [vmem:[%s515_s3 + $0x18] sm:$0xff]  ;;  %v434_v7 = vmov 0  }
   0x5   :  { %383 = vmatprep.mubr.msk.bf16.mxu1 %vm146_vm2, %v408_v4  ;;  %v113_v6 = vld [vmem:[%s515_s3 + $0x8] sm:$0xff]  ;;  %404 = vset.pattern.permute.xlu0 %v434_v7  ;;  %v114_v8 = vld [vmem:[%s515_s3 + $0x10] sm:$0xff]  ;;  %v112_v9 = vld [vmem:[%s515_s3] sm:$0xff]  ;;  %v435_v24 = vmov 0.0   ;;  %vm436_vm3 = vmmov 0   ;;  %s437_s14 = smov [#allocation2]  }
   0x6   :  { %372 = vmatmul.mubr.msk.bf16.vlgmr.msra.gmra.mxu0 %vm40_vm1, %v407_v3  ;;  %405 = vset.pattern.permute.xlu1 %v434_v7  ;;  %v243_v10 = vld [vmem:[%s517_s5] sm:$0x7]  ;;  %v409_v23 = vld [vmem:[%s514_s2 + $0x8] sm:$0xff]   ;;  %s337_s15 = sshll.u32 %s437_s14, 4  ;;  %s338_s15 = int_to_ptr.vmem [resolvable:$true] %s337_s15 }
   0x7   :  { %133 = vperm.xlu0 %404, %v115_v5   ;;  %123 = vperm.xlu1 %405, %v113_v6   ;;  %v242_v45 = vld [vmem:[%s516_s4] sm:$0x3]  ;;  %s412_s4 = scalar_lea.vmem %s338_s15, 64  ;;  %p417_p1 = scmp.lt.s32.totalorder %s338_s15, %s338_s15 }
   0x8   :  { %387 = vmatprep.subr.mxu0 %v435_v24  ;;  %395 = vmatprep.mubr.msk.bf16.mxu0 %vm436_vm3, %v435_v24  ;;  %p413_p0 = scmp.ne.s32.totalorder %s338_s15, %s412_s4  ;;  %p418_p2 = scmp.lt.s32.totalorder %s412_s4, %s412_s4 }
   0xa   :  { %p419_p3 = por %p418_p2, %p417_p1 }
   0xb   :  { %128 = vperm.xlu0 %404, %v114_v8   ;;  %118 = vperm.xlu1 %405, %v112_v9  }
   0xc   :  { %p420_p4 = pnand %p419_p3, %p413_p0 }
   0xf   :  { %246 = vperm.xlu0 %404, %v243_v10  }
  0x82   :  { %v134_v25 = vpop.permute.xlu0 %133  ;;  %v124_v26 = vpop.permute.xlu1 %123 }
  0x86   :  { %v129_v28 = vpop.permute.xlu0 %128  ;;  %v119_v31 = vpop.permute.xlu1 %118 }
  0x8a   :  { %v247_v46 = vpop.permute.xlu0 %246 }
  0xc6   :  { %v373_v11 = vpop.f32.mrf.mxu0 }
  0xc7   :  { %v102_v14 = vmul.f32 0.01, %v373_v11 }
  0xc8   :  { %v85_v12 = vpop.f32.mrf.mxu0 }
  0xc9   :  { %v106_v19 = vmax.f32 %v373_v11, %v102_v14  ;;  %v100_v20 = vmul.f32 0.01, %v85_v12 }
  0xca   :  { %v374_v13 = vpop.f32.mrf.mxu0 }
  0xcb   :  { %v103_v15 = vmul.f32 0.01, %v374_v13  ;;  %v104_v22 = vmax.f32 %v85_v12, %v100_v20 }
  0xcc   :  { %v88_v16 = vpop.f32.mrf.mxu0 }
  0xcd   :  { %v101_v17 = vmul.f32 0.01, %v88_v16  ;;  %v107_v18 = vmax.f32 %v374_v13, %v103_v15 }
  0xcf   :  { %375 = vmatprep.subr.mxu1 %v107_v18  ;;  %v105_v21 = vmax.f32 %v88_v16, %v101_v17 }
  0xd0   :  { %376 = vmatpush3.msra.mxu1 %v107_v18 }
  0xd1   :  { %377 = vmatprep.subr.mxu1 %v106_v19 }
  0xd2   :  { %378 = vmatpush3.msra.mxu1 %v106_v19 }
  0xd3   :  { %379 = vmatprep.subr.mxu1 %v105_v21 }
  0xd4   :  { %380 = vmatpush3.msra.mxu1 %v105_v21 }
  0xd5   :  { %381 = vmatprep.subr.mxu1 %v104_v22 }
  0xd6   :  { %382 = vmatpush3.msra.mxu1 %v104_v22 }
  0xd7   :  { %384 = vmatmul.mubr.msk.bf16.vlgmr.msra.gmra.mxu1 %vm146_vm2, %v409_v23 }
 0x197   :  { %v385_v27 = vpop.f32.mrf.mxu1 }
 0x198   :  { %v228_v30 = vadd.f32 %v385_v27, %v129_v28 }
 0x199   :  { %v219_v29 = vpop.f32.mrf.mxu1 }
 0x19a   :  { %v236_v35 = vmul.f32 0.01, %v228_v30  ;;  %v220_v36 = vadd.f32 %v219_v29, %v119_v31 }
 0x19b   :  { %v386_v32 = vpop.f32.mrf.mxu1 }
 0x19c   :  { %v231_v33 = vadd.f32 %v386_v32, %v134_v25  ;;  %v240_v41 = vmax.f32 %v228_v30, %v236_v35  ;;  %v234_v42 = vmul.f32 0.01, %v220_v36 }
 0x19d   :  { %v222_v34 = vpop.f32.mrf.mxu1 }
 0x19e   :  { %v237_v37 = vmul.f32 0.01, %v231_v33  ;;  %v223_v38 = vadd.f32 %v222_v34, %v124_v26  ;;  %v238_v44 = vmax.f32 %v220_v36, %v234_v42 }
 0x1a0   :  { %v241_v39 = vmax.f32 %v231_v33, %v237_v37  ;;  %v235_v40 = vmul.f32 0.01, %v223_v38 }
 0x1a2   :  { %388 = vmatpush3.msra.mxu0 %v241_v39  ;;  %v239_v43 = vmax.f32 %v223_v38, %v235_v40 }
 0x1a3   :  { %389 = vmatprep.subr.mxu0 %v435_v24 }
 0x1a4   :  { %390 = vmatpush3.msra.mxu0 %v240_v41 }
 0x1a5   :  { %391 = vmatprep.subr.mxu0 %v435_v24 }
 0x1a6   :  { %392 = vmatpush3.msra.mxu0 %v239_v43 }
 0x1a7   :  { %393 = vmatprep.subr.mxu0 %v435_v24 }
 0x1a8   :  { %394 = vmatpush3.msra.mxu0 %v238_v44 }
 0x1a9   :  { %396 = vmatmul.mubr.msk.bf16.vlgmr.msra.gmra.mxu0 %vm146_vm2, %v242_v45 }
 0x269   :  { %v318_v47 = vpop.f32.mrf.mxu0 }
 0x26a   :  { %v319_v48 = vadd.f32 %v318_v47, %v247_v46 }
 0x26b   :  { %v397_v49 = vpop.f32.mrf.mxu0 }
 0x26c   :  { %v324_v50 = vmul.f32 3.4965076, %v319_v48 }
 0x26d   :  { %v321_v51 = vpop.f32.mrf.mxu0 }
 0x26e   :  { %v325_v52 = vmul.f32 1.442695, %v324_v50 }
 0x26f   :  { %v398_v53 = vpop.f32.mrf.mxu0 }
 0x270   :  { %410 = vpow2.f32 %v325_v52 }
 0x27d   :  { %v411_v54 = vpop.eup %410 }
 0x27e   :  { %v354_v55 = vadd.f32 -1.0, %v411_v54 }
 0x280   :  { %v328_v56 = vmul.f32 0.03125, %v354_v55 }
 0x282   :  { %v329_v57 = vmax.f32 %v328_v56, 0.0 }
 0x284   :  { %330 = vst [vmem:[#allocation2] sm:$0x7] %v329_v57 }
 0x285   :  { %423 = shalt.err (!%p420_p4)
}
 0x286   :  { %340 = dma.vmem_to_hbm [thread:$0]  %s338_s15, 64, %s518_s6, [#allocation3]  }
 0x287   :  { %432 = dma.done.wait [#allocation3], 64  }
 0x288   :  { %433 = vsyncadd [#allocation3], 4294967232 }
 0x289   :  { %344 = vsyncpa [#allocation3], 1 }

</bundles_post_ra>
